<compile_context>
chip_gen: v7x
topology: tpu7x:2x2x1
jax: 0.10.0
libtpu: 0.0.40
codegen_flags: <defaults>
</compile_context>

<pallas_src>
import jax
import jax.numpy as jnp
from jax.experimental import pallas as pl
from jax.experimental.pallas import tpu as pltpu

EPS = 1e-6  # matches torch clamp(min=1e-6) in HSTU's l2-norm normalizer


# ------------------------------ VMEM sizing -------------------------------- #
def _vmem_limit_bytes() -> int:
    """Scoped-VMEM limit to request: most of physical VMEM, with headroom."""
    try:
        cap = int(pltpu.get_tpu_info().vmem_capacity_bytes)  # 64 MiB v7x, 128 MiB v5e/v6e
    except Exception:
        cap = 64 * 1024 * 1024                               # v7x-safe fallback
    return max(32 << 20, min(cap - (12 << 20), 100 << 20))


def _sublane_align(itemsize: int) -> int:
    # f32 -> 8 rows/vreg, bf16 -> 16, 8-bit -> 32 (sub-32-bit packs along sublanes).
    return max(8, 32 // max(itemsize, 1))


def _round_up(x: int, m: int) -> int:
    return ((x + m - 1) // m) * m


def _pick_block_rows(n_rows: int, per_row_bytes: int, budget_bytes: int,
                     itemsize: int, max_rows: int = 2048) -> int:
    align = _sublane_align(itemsize)
    rows = max(budget_bytes // max(per_row_bytes, 1), align)
    rows = min(rows, max_rows)                    # no forced >=4 steps (single-TC chips)
    rows = min(rows, _round_up(n_rows, align))
    rows = max(align, (rows // align) * align)
    return int(rows)


def _pad_offsets(offsets: jax.Array, r_pad: int) -> jax.Array:
    off = offsets.astype(jnp.int32).reshape(-1)
    return jnp.pad(off, (0, r_pad - off.shape[0]))


def _l2_epilogue(g_f32: jax.Array, out_dtype) -> jax.Array:
    sq = jnp.sum(g_f32 * g_f32, axis=-1, keepdims=True)          # XLU row reduce
    inv = jax.lax.rsqrt(jnp.maximum(sq, EPS * EPS))              # EUP; == 1/max(||g||, eps)
    return (g_f32 * inv).astype(out_dtype)


# --------------------- path A: one-hot MXU gather (small X) ----------------- #
def _onehot_gather_l2norm_kernel(off_ref, pool_ref, o_ref):
    """off_ref: (rows, 1) int32 | pool_ref: (X, D) resident in VMEM | o_ref: (rows, D)."""
    rows = o_ref.shape[0]
    num_cand = pool_ref.shape[0]

    idx = off_ref[...]                                                   # (rows, 1)
    cand = jax.lax.broadcasted_iota(jnp.int32, (rows, num_cand), 1)
    onehot = (cand == idx).astype(jnp.bfloat16)                          # exact 0/1 in bf16
    pool = pool_ref[...]

    if pool.dtype == jnp.bfloat16:
        # Native single-pass bf16 x bf16 -> f32 (exact for 0/1 weights).
        g = jnp.dot(onehot, pool, preferred_element_type=jnp.float32)
    else:
        # f32 pool: 3-way bf16 split of the pool only (3 single-pass matmuls,
        # summed in f32) instead of Precision.HIGHEST's 3-6 passes.
        p32 = pool.astype(jnp.float32)
        hi = p32.astype(jnp.bfloat16)
        rem = p32 - hi.astype(jnp.float32)
        mid = rem.astype(jnp.bfloat16)
        lo = (rem - mid.astype(jnp.float32)).astype(jnp.bfloat16)
        g = (jnp.dot(onehot, hi, preferred_element_type=jnp.float32)
             + jnp.dot(onehot, mid, preferred_element_type=jnp.float32)
             + jnp.dot(onehot, lo, preferred_element_type=jnp.float32))

    o_ref[...] = _l2_epilogue(g, o_ref.dtype)


def _onehot_path(offsets, pool, vmem_limit):
    R = offsets.shape[0]
    X, D = pool.shape
    itemsize = pool.dtype.itemsize
    # Pool resident once (single-buffered); + bf16 split temporaries for f32 pools.
    pool_resident = X * D * itemsize + (3 * X * D * 2 if pool.dtype != jnp.bfloat16 else 0)
    # Per-row: offsets tile padded to 128 lanes (x2 bufs), out (x2 bufs),
    # iota/one-hot temporaries, f32 compute temps.
    per_row = 2 * 128 * 4 + 2 * D * itemsize + 8 * X + 4 * D * 4
    budget = int(0.6 * vmem_limit) - pool_resident
    block_rows = _pick_block_rows(R, per_row, budget, itemsize, max_rows=1024)
    n_blocks = pl.cdiv(R, block_rows)
    r_pad = n_blocks * block_rows
    off2d = _pad_offsets(offsets, r_pad).reshape(r_pad, 1)

    return pl.pallas_call(
        _onehot_gather_l2norm_kernel,
        out_shape=jax.ShapeDtypeStruct((R, D), pool.dtype),
        grid_spec=pltpu.PrefetchScalarGridSpec(
            num_scalar_prefetch=0,
            grid=(n_blocks,),
            in_specs=[
                pl.BlockSpec((block_rows, 1), lambda i: (i, 0)),
                # whole pool, single VMEM copy (no per-step double buffer)
                pl.BlockSpec(memory_space=pltpu.MemorySpace.VMEM),
            ],
            out_specs=pl.BlockSpec((block_rows, D), lambda i: (i, 0)),
        ),
        compiler_params=pltpu.CompilerParams(
            dimension_semantics=("parallel",),
            vmem_limit_bytes=vmem_limit,
        ),
    )(off2d, pool)


# ------------- path B: scalar-indexed gather, pool resident in VMEM --------- #
def _vmem_gather_l2norm_kernel(off_ref, pool_ref, o_ref, g_ref):
    """off_ref: SMEM (R_pad,) int32 | pool_ref: (X, D) VMEM | o/g: (rows, D)."""
    rows = o_ref.shape[0]
    num_cand = pool_ref.shape[0]
    base = pl.program_id(0) * rows

    def body(r, carry):
        idx = jnp.clip(off_ref[base + r], 0, num_cand - 1)     # VMEM OOB is unchecked
        g_ref[pl.ds(r, 1), :] = pool_ref[pl.ds(idx, 1), :]     # dynamic row copy
        return carry

    jax.lax.fori_loop(0, rows, body, 0)
    o_ref[...] = _l2_epilogue(g_ref[...].astype(jnp.float32), o_ref.dtype)


def _vmem_gather_path(offsets, pool, vmem_limit):
    R = offsets.shape[0]
    X, D = pool.shape
    itemsize = pool.dtype.itemsize
    pool_resident = X * D * itemsize
    per_row = 3 * D * itemsize + 3 * D * 4      # gather scratch + out x2 + f32 temps
    budget = int(0.6 * vmem_limit) - pool_resident
    block_rows = _pick_block_rows(R, per_row, budget, itemsize, max_rows=1024)
    n_blocks = pl.cdiv(R, block_rows)
    r_pad = n_blocks * block_rows
    off_pad = _pad_offsets(offsets, r_pad)

    return pl.pallas_call(
        _vmem_gather_l2norm_kernel,
        out_shape=jax.ShapeDtypeStruct((R, D), pool.dtype),
        grid_spec=pltpu.PrefetchScalarGridSpec(
            num_scalar_prefetch=1,               # offsets -> SMEM
            grid=(n_blocks,),
            in_specs=[pl.BlockSpec(memory_space=pltpu.MemorySpace.VMEM)],
            out_specs=pl.BlockSpec((block_rows, D), lambda i, off: (i, 0)),
            scratch_shapes=[pltpu.VMEM((block_rows, D), pool.dtype)],
        ),
        compiler_params=pltpu.CompilerParams(
            dimension_semantics=("parallel",),
            vmem_limit_bytes=vmem_limit,
        ),
    )(off_pad, pool)


# --------------- path C: per-row DMA gather, pool stays in HBM -------------- #
def _hbm_gather_l2norm_kernel(off_ref, pool_hbm, o_ref, g_ref, sems):
    """off_ref: SMEM int32 | pool_hbm: (X, D) in HBM (pl.ANY) | g_ref: VMEM scratch."""
    rows = o_ref.shape[0]
    num_cand = pool_hbm.shape[0]
    base = pl.program_id(0) * rows

    def issue(r, carry):
        idx = jnp.clip(off_ref[base + r], 0, num_cand - 1)
        pltpu.make_async_copy(pool_hbm.at[pl.ds(idx, 1), :],
                              g_ref.at[pl.ds(r, 1), :],
                              sems.at[r]).start()
        return carry

    def drain(r, carry):
        pltpu.make_async_copy(pool_hbm.at[pl.ds(0, 1), :],
                              g_ref.at[pl.ds(r, 1), :],
                              sems.at[r]).wait()
        return carry

    jax.lax.fori_loop(0, rows, issue, 0)
    jax.lax.fori_loop(0, rows, drain, 0)
    o_ref[...] = _l2_epilogue(g_ref[...].astype(jnp.float32), o_ref.dtype)


def _hbm_gather_path(offsets, pool, vmem_limit):
    R = offsets.shape[0]
    X, D = pool.shape
    itemsize = pool.dtype.itemsize
    per_row = 3 * D * itemsize + 3 * D * 4
    budget = int(0.5 * vmem_limit)
    # Cap rows/block to bound outstanding DMAs + per-row semaphores.
    block_rows = _pick_block_rows(R, per_row, budget, itemsize, max_rows=256)
    n_blocks = pl.cdiv(R, block_rows)
    r_pad = n_blocks * block_rows
    off_pad = _pad_offsets(offsets, r_pad)

    return pl.pallas_call(
        _hbm_gather_l2norm_kernel,
        out_shape=jax.ShapeDtypeStruct((R, D), pool.dtype),
        grid_spec=pltpu.PrefetchScalarGridSpec(
            num_scalar_prefetch=1,
            grid=(n_blocks,),
            in_specs=[pl.BlockSpec(memory_space=pl.ANY)],     # pool stays in HBM
            out_specs=pl.BlockSpec((block_rows, D), lambda i, off: (i, 0)),
            scratch_shapes=[pltpu.VMEM((block_rows, D), pool.dtype),
                            pltpu.SemaphoreType.DMA((block_rows,))],
        ),
        compiler_params=pltpu.CompilerParams(
            dimension_semantics=("arbitrary",),
            vmem_limit_bytes=vmem_limit,
        ),
    )(off_pad, pool)


# ------------------------- fused gather + normalize ------------------------- #
def gather_l2_normalize_pallas(offsets: jax.Array, pool: jax.Array, *, mode: str = None):
    """Fused (gather rows of `pool` at `offsets`) + row-wise L2 normalize.

    offsets: [R] int32 in [0, X);  pool: [X, D]  ->  [R, D] in pool.dtype
    """
    (R,) = offsets.shape
    X, D = pool.shape
    itemsize = pool.dtype.itemsize
    vmem_limit = _vmem_limit_bytes()

    pool_bytes = X * D * itemsize                           # single-buffered resident copy
    pool_fits_vmem = pool_bytes <= int(0.5 * vmem_limit)
    onehot_max_x = 512 if pool.dtype == jnp.bfloat16 else 256   # MXU vs gather crossover

    if mode is None:
        if pool_fits_vmem and X <= onehot_max_x:
            mode = "onehot"
        elif pool_fits_vmem:
            mode = "vmem_gather"
        else:
            mode = "hbm_gather"

    if mode == "onehot":
        return _onehot_path(offsets, pool, vmem_limit)
    if mode == "vmem_gather":
        return _vmem_gather_path(offsets, pool, vmem_limit)
    return _hbm_gather_path(offsets, pool, vmem_limit)


# -------------------- standalone L2-normalize (norm_func) ------------------- #
def _l2_normalize_kernel(x_ref, o_ref):
    o_ref[...] = _l2_epilogue(x_ref[...].astype(jnp.float32), o_ref.dtype)


def l2_normalize_pallas(x: jax.Array) -> jax.Array:
    """L2-normalize each row of a [R, D] array with a Pallas TPU kernel."""
    R, D = x.shape
    itemsize = x.dtype.itemsize
    vmem_limit = _vmem_limit_bytes()
    per_row = 4 * D * itemsize + 2 * D * 4        # in+out double-buffered + f32 temps
    block_rows = _pick_block_rows(R, per_row, int(0.6 * vmem_limit), itemsize)
    grid = (pl.cdiv(R, block_rows),)
    return pl.pallas_call(
        _l2_normalize_kernel,
        out_shape=jax.ShapeDtypeStruct((R, D), x.dtype),
        grid_spec=pltpu.PrefetchScalarGridSpec(
            num_scalar_prefetch=0,
            grid=grid,
            in_specs=[pl.BlockSpec((block_rows, D), lambda i: (i, 0))],
            out_specs=pl.BlockSpec((block_rows, D), lambda i: (i, 0)),
        ),
        compiler_params=pltpu.CompilerParams(
            dimension_semantics=("parallel",),
            vmem_limit_bytes=vmem_limit,
        ),
    )(x)


# --------------------------- Sampler module (JAX) --------------------------- #
class NegativesSampler:
    """JAX port of the abstract NegativesSampler; concrete in-batch sampling."""

    def __init__(self, norm_func):
        self._normalizer = norm_func

    def normalize_embeddings(self, x: jax.Array) -> jax.Array:
        return self._normalizer(x)

    def __call__(
        self,
        positive_ids: jax.Array,                   # [B, L] int32
        num_to_sample: int,
        sampled_candidate_ids: jax.Array,          # [X] int32
        sampled_candidate_embeddings: jax.Array,   # [X, D]
        *,
        key: jax.Array,
    ):
        B, L = positive_ids.shape
        X, D = sampled_candidate_embeddings.shape
        # Uniform "random" offsets into the candidate pool (cheap glue; the
        # memory-bound gather + normalize runs fused inside the Pallas kernel).
        offsets = jax.random.randint(key, (B, L, num_to_sample), 0, X, dtype=jnp.int32)
        sampled_ids = jnp.take(sampled_candidate_ids, offsets, axis=0)      # [B, L, n]
        normalized = gather_l2_normalize_pallas(
            offsets.reshape(-1), sampled_candidate_embeddings)              # fused, all pool sizes
        return sampled_ids, normalized.reshape(B, L, num_to_sample, D)


# ----------------------------------- main ----------------------------------- #
if __name__ == "__main__":
    key = jax.random.PRNGKey(0)
    k_ids, k_emb, k_pos, k_sample, k_off = jax.random.split(key, 5)

    B, L = 2, 8            # batch of positives, sequence length
    num_to_sample = 4
    X, D = 16, 128         # candidate pool size, embedding dim (multiple of 128)

    positive_ids = jax.random.randint(k_pos, (B, L), 0, 1000, dtype=jnp.int32)
    sampled_candidate_ids = jax.random.randint(k_ids, (X,), 0, 1000, dtype=jnp.int32)
    sampled_candidate_embeddings = jax.random.normal(k_emb, (X, D), dtype=jnp.float32)

    sampler = NegativesSampler(norm_func=l2_normalize_pallas)
    sampled_ids, sampled_neg_emb = sampler(
        positive_ids, num_to_sample,
        sampled_candidate_ids, sampled_candidate_embeddings, key=k_sample)
    sampled_ids = jax.block_until_ready(sampled_ids)
    sampled_neg_emb = jax.block_until_ready(sampled_neg_emb)

    # Pure-JAX reference (same key -> same offsets).
    offsets_ref = jax.random.randint(k_sample, (B, L, num_to_sample), 0, X, dtype=jnp.int32)
    gathered_ref = jnp.take(sampled_candidate_embeddings, offsets_ref.reshape(-1), axis=0)
    norm_ref = gathered_ref / jnp.maximum(
        jnp.linalg.norm(gathered_ref, axis=-1, keepdims=True), EPS)
    norm_ref = norm_ref.reshape(B, L, num_to_sample, D)
    ids_ref = jnp.take(sampled_candidate_ids, offsets_ref, axis=0)

    assert sampled_ids.shape == (B, L, num_to_sample)
    assert sampled_neg_emb.shape == (B, L, num_to_sample, D)
    assert jnp.array_equal(sampled_ids, ids_ref)
    assert jnp.allclose(sampled_neg_emb, norm_ref, atol=2e-5, rtol=2e-5)

    # Exercise all three fused gather paths explicitly (ragged R hits tail padding).
    R_test = 37
    off_test = jax.random.randint(k_off, (R_test,), 0, X, dtype=jnp.int32)
    g_t = jnp.take(sampled_candidate_embeddings, off_test, axis=0)
    ref_t = g_t / jnp.maximum(jnp.linalg.norm(g_t, axis=-1, keepdims=True), EPS)
    for path_mode in ("onehot", "vmem_gather", "hbm_gather"):
        out_t = jax.block_until_ready(
            gather_l2_normalize_pallas(off_test, sampled_candidate_embeddings, mode=path_mode))
        assert out_t.shape == (R_test, D), path_mode
        assert jnp.allclose(out_t, ref_t, atol=2e-5, rtol=2e-5), path_mode

    # Also exercise the standalone normalizer (the module's norm_func).
    direct_norm = jax.block_until_ready(
        sampler.normalize_embeddings(sampled_candidate_embeddings))
    direct_ref = sampled_candidate_embeddings / jnp.maximum(
        jnp.linalg.norm(sampled_candidate_embeddings, axis=-1, keepdims=True), EPS)
    assert jnp.allclose(direct_norm, direct_ref, atol=2e-5, rtol=2e-5)

    print("KERNEL_OK")
</pallas_src>

<mosaic_0001>
module attributes {stable_mosaic.version = 11 : i64} {
  func.func @_onehot_gather_l2norm_kernel(%arg0: i32, %arg1: memref<64x1xi32, #tpu.memory_space<vmem>>, %arg2: memref<16x128xf32, #tpu.memory_space<vmem>>, %arg3: memref<64x128xf32, #tpu.memory_space<vmem>>) attributes {dimension_semantics = [#tpu.dimension_semantics<parallel>], iteration_bounds = array<i64: 1>, scalar_prefetch = 0 : i64, scratch_operands = 0 : i64, tpu.core_type = #tpu.core_type<tc>, window_params = [{transform_indices = @transform_0, window_bounds = array<i64: 64, 1>}, {pipeline_mode = #tpu.pipeline_mode<synchronous>, transform_indices = @transform_1, window_bounds = array<i64: 16, 128>}, {transform_indices = @transform_2, window_bounds = array<i64: 64, 128>}]} {
    %c0 = arith.constant 0 : index
    %c0_0 = arith.constant 0 : index
    %0 = vector.load %arg1[%c0, %c0_0] : memref<64x1xi32, #tpu.memory_space<vmem>>, vector<64x1xi32>
    %1 = tpu.iota {dimensions = array<i32: 1>} : vector<64x16xi32>
    %2 = vector.broadcast %0 : vector<64x1xi32> to vector<64x16xi32>
    %3 = arith.cmpi eq, %1, %2 : vector<64x16xi32>
    %4 = arith.extui %3 : vector<64x16xi1> to vector<64x16xi32>
    %5 = arith.sitofp %4 : vector<64x16xi32> to vector<64x16xf32>
    %6 = arith.truncf %5 : vector<64x16xf32> to vector<64x16xbf16>
    %c0_1 = arith.constant 0 : index
    %c0_2 = arith.constant 0 : index
    %7 = vector.load %arg2[%c0_1, %c0_2] : memref<16x128xf32, #tpu.memory_space<vmem>>, vector<16x128xf32>
    %8 = arith.truncf %7 : vector<16x128xf32> to vector<16x128xbf16>
    %9 = arith.extf %8 : vector<16x128xbf16> to vector<16x128xf32>
    %10 = arith.subf %7, %9 : vector<16x128xf32>
    %11 = arith.truncf %10 : vector<16x128xf32> to vector<16x128xbf16>
    %12 = arith.extf %11 : vector<16x128xbf16> to vector<16x128xf32>
    %13 = arith.subf %10, %12 : vector<16x128xf32>
    %14 = arith.truncf %13 : vector<16x128xf32> to vector<16x128xbf16>
    %cst = arith.constant dense<0.000000e+00> : vector<64x128xf32>
    %15 = tpu.matmul %6, %8, %cst {dimension_numbers = #tpu.dot_dimension_numbers<[1], [0], [0], [1], [0, 0, 1, 1], [], []>} : vector<64x16xbf16>, vector<16x128xbf16>, vector<64x128xf32> -> vector<64x128xf32>
    %cst_3 = arith.constant dense<0.000000e+00> : vector<64x128xf32>
    %16 = tpu.matmul %6, %11, %cst_3 {dimension_numbers = #tpu.dot_dimension_numbers<[1], [0], [0], [1], [0, 0, 1, 1], [], []>} : vector<64x16xbf16>, vector<16x128xbf16>, vector<64x128xf32> -> vector<64x128xf32>
    %17 = arith.addf %15, %16 : vector<64x128xf32>
    %cst_4 = arith.constant dense<0.000000e+00> : vector<64x128xf32>
    %18 = tpu.matmul %6, %14, %cst_4 {dimension_numbers = #tpu.dot_dimension_numbers<[1], [0], [0], [1], [0, 0, 1, 1], [], []>} : vector<64x16xbf16>, vector<16x128xbf16>, vector<64x128xf32> -> vector<64x128xf32>
    %19 = arith.addf %17, %18 : vector<64x128xf32>
    %20 = arith.mulf %19, %19 : vector<64x128xf32>
    %cst_5 = arith.constant dense<0.000000e+00> : vector<64xf32>
    %21 = vector.multi_reduction <add>, %20, %cst_5 [1] : vector<64x128xf32> to vector<64xf32>
    %22 = vector.shape_cast %21 : vector<64xf32> to vector<64x1xf32>
    %cst_6 = arith.constant 9.99999996E-13 : f32
    %23 = vector.broadcast %cst_6 : f32 to vector<64x1xf32>
    %24 = arith.maximumf %22, %23 : vector<64x1xf32>
    %25 = math.rsqrt %24 : vector<64x1xf32>
    %26 = vector.broadcast %25 : vector<64x1xf32> to vector<64x128xf32>
    %27 = arith.mulf %19, %26 : vector<64x128xf32>
    %c0_7 = arith.constant 0 : index
    %c0_8 = arith.constant 0 : index
    %28 = vector.load %arg3[%c0_7, %c0_8] : memref<64x128xf32, #tpu.memory_space<vmem>>, vector<64x128xf32>
    tpu.vector_store %arg3[%c0_7, %c0_8], %27 {strides = array<i32>} : memref<64x128xf32, #tpu.memory_space<vmem>>, vector<64x128xf32>,
    return
  }
  func.func @transform_0(%arg0: i32) -> (i32, i32) {
    %c0_i32 = arith.constant 0 : i32
    %c0_i32_0 = arith.constant 0 : i32
    return %arg0, %c0_i32 : i32, i32
  }
  func.func @transform_1(%arg0: i32) -> (i32, i32) {
    %c0_i32 = arith.constant 0 : i32
    %c0_i32_0 = arith.constant 0 : i32
    %c0_i32_1 = arith.constant 0 : i32
    return %c0_i32, %c0_i32_0 : i32, i32
  }
  func.func @transform_2(%arg0: i32) -> (i32, i32) {
    %c0_i32 = arith.constant 0 : i32
    %c0_i32_0 = arith.constant 0 : i32
    return %arg0, %c0_i32 : i32, i32
  }
}

</mosaic_0001>

<bundles_post_ra>
// kernel: tpu_custom_call.1
= control target key start
LH: loop header
LB: loop body
LE: loop exit
PB: predicated region body
PF: predicated region fallthrough
CT: control target
= control target key end

     0   :  { %v506_v2 = vmov 0   ;;  %s590_s0 = inlined_call_operand.vmem [shape: s32[64,1], index: 0, kind: input, shape index: {}]   ;;  %s591_s1 = inlined_call_operand.vmem [shape: f32[16,128], index: 1, kind: input, shape index: {}]   ;;  %s592_s2 = inlined_call_operand.hbm [shape: f32[64,128], index: 2, kind: output, shape index: {}]  }
   0x1   :  { %v15_v0 = vld [vmem:[%s590_s0 + $0x10] sm:$0xff]  ;;  %v13_v1 = vld [vmem:[%s590_s0] sm:$0xff]  ;;  %465 = vset.pattern.permute.xlu1 %v506_v2  ;;  %464 = vset.pattern.permute.xlu0 %v506_v2  ;;  %v16_v3 = vld [vmem:[%s590_s0 + $0x18] sm:$0xff] }
   0x2   :  { %30 = vperm.xlu1 %465, %v15_v0   ;;  %24 = vperm.xlu0 %464, %v13_v1   ;;  %v75_v4 = vld [vmem:[%s591_s1] sm:$0xff]  ;;  %v14_v5 = vld [vmem:[%s590_s0 + $0x8] sm:$0xff] }
   0x3   :  { %v76_v6 = vld [vmem:[%s591_s1 + $0x8] sm:$0xff] }
   0x4   :  { %7 = vsyncpa [#allocation3], 0  ;;  %v77_v7 = vpack.c.bf16 %v76_v6, %v75_v4  ;;  %v18_v10 = vld [vmem:[%s590_s0 + $0x28] sm:$0xff]  ;;  %v17_v11 = vld [vmem:[%s590_s0 + $0x20] sm:$0xff]  ;;  %v21_v22 = vlaneseq  ;;  %vm88_vm4 = vcmask 130048   ;;  %v507_v28 = vmov 0.0  }
   0x5   :  { %v20_v15 = vld [vmem:[%s590_s0 + $0x38] sm:$0xff]  ;;  %v19_v16 = vld [vmem:[%s590_s0 + $0x30] sm:$0xff]  ;;  %s508_s0 = smov [#allocation2]  }
   0x6   :  { %33 = vperm.xlu1 %465, %v16_v3   ;;  %27 = vperm.xlu0 %464, %v14_v5   ;;  %v78_v8 = vunpack.c.l.bf16 %v77_v7  ;;  %v79_v9 = vunpack.c.h.bf16 %v77_v7  ;;  %v22_v23 = vand.u32 127, %v21_v22  ;;  %s365_s28 = sshll.u32 %s508_s0, 4  ;;  %s366_s28 = int_to_ptr.vmem [resolvable:$true] %s365_s28 }
   0x7   :  { %421 = vmatprep.subr.bf16.mxu0 %v77_v7  ;;  %s482_s29 = scalar_lea.vmem %s366_s28, 1024  ;;  %p487_p1 = scmp.lt.s32.totalorder %s366_s28, %s366_s28 }
   0x8   :  { %v80_v12 = vsub.f32 %v75_v4, %v78_v8  ;;  %v81_v13 = vsub.f32 %v76_v6, %v79_v9  ;;  %422 = vmatpush3.bf16.msra.mxu0 %v77_v7  ;;  %p483_p0 = scmp.ne.s32.totalorder %s366_s28, %s482_s29  ;;  %p488_p2 = scmp.lt.s32.totalorder %s482_s29, %s482_s29 }
   0xa   :  { %39 = vperm.xlu1 %465, %v18_v10   ;;  %36 = vperm.xlu0 %464, %v17_v11   ;;  %v82_v14 = vpack.c.bf16 %v81_v13, %v80_v12  ;;  %p489_p3 = por %p488_p2, %p487_p1 }
   0xc   :  { %411 = vmatprep.subr.bf16.mxu1 %v82_v14  ;;  %v83_v17 = vunpack.c.l.bf16 %v82_v14  ;;  %v84_v18 = vunpack.c.h.bf16 %v82_v14  ;;  %p490_p4 = pnand %p489_p3, %p483_p0 }
   0xd   :  { %412 = vmatpush3.bf16.msra.mxu1 %v82_v14 }
   0xe   :  { %45 = vperm.xlu1 %465, %v20_v15   ;;  %42 = vperm.xlu0 %464, %v19_v16   ;;  %v85_v19 = vsub.f32 %v80_v12, %v83_v17  ;;  %v86_v20 = vsub.f32 %v81_v13, %v84_v18 }
   0xf   :  { %441 = vmatprep.subr.bf16.mxu1 %v77_v7 }
  0x10   :  { %v87_v21 = vpack.c.bf16 %v86_v20, %v85_v19 }
  0x12   :  { %431 = vmatprep.subr.bf16.mxu0 %v87_v21 }
  0x81   :  { %v31_v24 = vpop.permute.xlu1 %30  ;;  %v25_v25 = vpop.permute.xlu0 %24 }
  0x82   :  { %vm49_vm0 = vcmp.eq.s32.totalorder %v22_v23, %v31_v24  ;;  %vm47_vm1 = vcmp.eq.s32.totalorder %v22_v23, %v25_v25 }
  0x83   :  { %v378_v29 = vsel %vm49_vm0, 1.0, %v507_v28  ;;  %v376_v30 = vsel %vm47_vm1, 1.0, %v507_v28 }
  0x85   :  { %v34_v26 = vpop.permute.xlu1 %33  ;;  %v28_v27 = vpop.permute.xlu0 %27 }
  0x86   :  { %vm50_vm2 = vcmp.eq.s32.totalorder %v22_v23, %v34_v26  ;;  %vm48_vm3 = vcmp.eq.s32.totalorder %v22_v23, %v28_v27 }
  0x87   :  { %v379_v31 = vsel %vm50_vm2, 1.0, %v507_v28  ;;  %v377_v32 = vsel %vm48_vm3, 1.0, %v507_v28 }
  0x88   :  { %v72_v33 = vpack.c.bf16 %v379_v31, %v378_v29  ;;  %v71_v34 = vpack.c.bf16 %v377_v32, %v376_v30 }
  0x89   :  { %v40_v35 = vpop.permute.xlu1 %39  ;;  %v37_v36 = vpop.permute.xlu0 %36 }
  0x8a   :  { %vm52_vm5 = vcmp.eq.s32.totalorder %v22_v23, %v40_v35  ;;  %vm51_vm6 = vcmp.eq.s32.totalorder %v22_v23, %v37_v36  ;;  %413 = vmatprep.mubr.msk.bf16.mxu1 %vm88_vm4, %v71_v34  ;;  %423 = vmatprep.mubr.msk.bf16.mxu0 %vm88_vm4, %v71_v34 }
  0x8b   :  { %v381_v37 = vsel %vm52_vm5, 1.0, %v507_v28  ;;  %v380_v38 = vsel %vm51_vm6, 1.0, %v507_v28  ;;  %414 = vmatmul.mubr.msk.bf16.vlgmr.msra.gmra.mrb[0].mxu1 %vm88_vm4, %v72_v33  ;;  %424 = vmatmul.mubr.msk.bf16.vlgmr.msra.gmra.mrb[0].mxu0 %vm88_vm4, %v72_v33 }
  0x8c   :  { %v73_v39 = vpack.c.bf16 %v381_v37, %v380_v38  ;;  %432 = vmatpush3.bf16.msra.mxu0 %v87_v21  ;;  %442 = vmatpush3.bf16.msra.mxu1 %v77_v7 }
  0x8d   :  { %433 = vmatprep.mubr.msk.bf16.mxu0 %vm88_vm4, %v71_v34  ;;  %v46_v40 = vpop.permute.xlu1 %45  ;;  %v43_v41 = vpop.permute.xlu0 %42 }
  0x8e   :  { %vm54_vm7 = vcmp.eq.s32.totalorder %v22_v23, %v46_v40  ;;  %vm53_vm8 = vcmp.eq.s32.totalorder %v22_v23, %v43_v41  ;;  %417 = vmatprep.mubr.msk.bf16.mxu1 %vm88_vm4, %v73_v39 }
  0x8f   :  { %v383_v42 = vsel %vm54_vm7, 1.0, %v507_v28  ;;  %v382_v43 = vsel %vm53_vm8, 1.0, %v507_v28 }
  0x90   :  { %v74_v44 = vpack.c.bf16 %v383_v42, %v382_v43 }
  0x93   :  { %418 = vmatmul.mubr.msk.bf16.gmra.mrb[4].mxu1 %vm88_vm4, %v74_v44 }
  0x94   :  { %427 = vmatprep.mubr.msk.bf16.mxu1 %vm88_vm4, %v73_v39 }
  0x97   :  { %434 = vmatmul.mubr.msk.bf16.vlgmr.msra.gmra.mrb[0].mxu0 %vm88_vm4, %v72_v33 }
  0x98   :  { %437 = vmatprep.mubr.msk.bf16.mxu0 %vm88_vm4, %v73_v39 }
  0x9f   :  { %428 = vmatmul.mubr.msk.bf16.vlgmr.msra.gmra.mrb[4].mxu1 %vm88_vm4, %v74_v44  ;;  %438 = vmatmul.mubr.msk.bf16.gmra.mrb[4].mxu0 %vm88_vm4, %v74_v44 }
 0x15e   :  { %v415_v45 = vpop.f32.mrb[0].mxu1 }
 0x15f   :  { %v135_v46 = vpop.f32.mrb[1].mxu1 }
 0x160   :  { %v416_v47 = vpop.f32.mrb[2].mxu1 }
 0x161   :  { %v138_v48 = vpop.f32.mrb[3].mxu1 }
 0x16a   :  { %v435_v49 = vpop.f32.mrb[0].mxu0 }
 0x16b   :  { %v443_v50 = vadd.f32 %v435_v49, %v415_v45  ;;  %v265_v51 = vpop.f32.mrb[1].mxu0 }
 0x16c   :  { %v444_v52 = vadd.f32 %v265_v51, %v135_v46  ;;  %v436_v53 = vpop.f32.mrb[2].mxu0 }
 0x16d   :  { %v568_v54 = vadd.f32 %v436_v53, %v416_v47  ;;  %v268_v55 = vpop.f32.mrb[3].mxu0  ;;  %v306_v56 = vmul.f32 %v443_v50, %v443_v50 }
 0x16e   :  { %v446_v57 = vadd.f32 %v268_v55, %v138_v48  ;;  %v304_v59 = vmul.f32 %v444_v52, %v444_v52 }
 0x16f   :  { %316 = vadd.xlane.f32.xlu0 %v306_v56  ;;  %v307_v7 = vmul.f32 %v568_v54, %v568_v54 }
 0x170   :  { %v305_v58 = vmul.f32 %v446_v57, %v446_v57 }
 0x172   :  { %314 = vadd.xlane.f32.xlu1 %v305_v58  ;;  %v429_v60 = vpop.f32.mrb[4].mxu1  ;;  %v439_v61 = vpop.f32.mrb[4].mxu0 }
 0x173   :  { %v570_v62 = vadd.f32 %v439_v61, %v429_v60  ;;  %312 = vadd.xlane.f32.xlu0 %v304_v59  ;;  %v216_v63 = vpop.f32.mrb[5].mxu1  ;;  %v281_v0 = vpop.f32.mrb[5].mxu0 }
 0x174   :  { %v448_v1 = vadd.f32 %v281_v0, %v216_v63  ;;  %v430_v2 = vpop.f32.mrb[6].mxu1  ;;  %v440_v3 = vpop.f32.mrb[6].mxu0 }
 0x175   :  { %v449_v4 = vadd.f32 %v440_v3, %v430_v2  ;;  %v219_v5 = vpop.f32.mrb[7].mxu1  ;;  %v284_v6 = vpop.f32.mrb[7].mxu0  ;;  %v310_v11 = vmul.f32 %v570_v62, %v570_v62 }
 0x176   :  { %v450_v8 = vadd.f32 %v284_v6, %v219_v5  ;;  %v308_v9 = vmul.f32 %v448_v1, %v448_v1 }
 0x177   :  { %318 = vadd.xlane.f32.xlu0 %v307_v7  ;;  %v311_v12 = vmul.f32 %v449_v4, %v449_v4 }
 0x178   :  { %320 = vadd.xlane.f32.xlu1 %v308_v9  ;;  %v309_v10 = vmul.f32 %v450_v8, %v450_v8 }
 0x17b   :  { %322 = vadd.xlane.f32.xlu0 %v309_v10 }
 0x17c   :  { %324 = vadd.xlane.f32.xlu1 %v310_v11 }
 0x17f   :  { %326 = vadd.xlane.f32.xlu0 %v311_v12 }
 0x1fc   :  { %v317_v13 = vpop.xlane.xlu0 %316 }
 0x1fd   :  { %v330_v14 = vmax.f32 %v317_v13, 1e-12 }
 0x1ff   :  { %466 = vrsqrt.f32 %v330_v14  ;;  %v315_v15 = vpop.xlane.xlu1 %314 }
 0x200   :  { %v329_v16 = vmax.f32 %v315_v15, 1e-12  ;;  %v313_v17 = vpop.xlane.xlu0 %312 }
 0x201   :  { %v328_v18 = vmax.f32 %v313_v17, 1e-12 }
 0x202   :  { %468 = vrsqrt.f32 %v329_v16 }
 0x203   :  { %470 = vrsqrt.f32 %v328_v18 }
 0x204   :  { %v319_v19 = vpop.xlane.xlu0 %318 }
 0x205   :  { %v331_v20 = vmax.f32 %v319_v19, 1e-12  ;;  %v321_v21 = vpop.xlane.xlu1 %320 }
 0x206   :  { %v332_v22 = vmax.f32 %v321_v21, 1e-12 }
 0x207   :  { %472 = vrsqrt.f32 %v331_v20 }
 0x208   :  { %474 = vrsqrt.f32 %v332_v22  ;;  %v323_v23 = vpop.xlane.xlu0 %322 }
 0x209   :  { %v467_v24 = vpop.eup %466  ;;  %v333_v25 = vmax.f32 %v323_v23, 1e-12  ;;  %v325_v26 = vpop.xlane.xlu1 %324 }
 0x20a   :  { %v346_v27 = vmul.f32 %v467_v24, %v443_v50  ;;  %v334_v28 = vmax.f32 %v325_v26, 1e-12 }
 0x20b   :  { %476 = vrsqrt.f32 %v333_v25 }
 0x20c   :  { %v469_v29 = vpop.eup %468  ;;  %354 = vst [vmem:[#allocation2 + $0x10] sm:$0xff] %v346_v27  ;;  %478 = vrsqrt.f32 %v334_v28  ;;  %v327_v30 = vpop.xlane.xlu0 %326 }
 0x20d   :  { %v471_v31 = vpop.eup %470  ;;  %v345_v32 = vmul.f32 %v469_v29, %v446_v57  ;;  %v335_v33 = vmax.f32 %v327_v30, 1e-12 }
 0x20e   :  { %v344_v34 = vmul.f32 %v471_v31, %v444_v52 }
 0x20f   :  { %353 = vst [vmem:[#allocation2 + $0x8] sm:$0xff] %v345_v32  ;;  %480 = vrsqrt.f32 %v335_v33 }
 0x210   :  { %352 = vst [vmem:[#allocation2] sm:$0xff] %v344_v34 }
 0x211   :  { %v473_v35 = vpop.eup %472 }
 0x212   :  { %v475_v36 = vpop.eup %474  ;;  %v347_v37 = vmul.f32 %v473_v35, %v568_v54 }
 0x213   :  { %v348_v38 = vmul.f32 %v475_v36, %v448_v1 }
 0x214   :  { %355 = vst [vmem:[#allocation2 + $0x18] sm:$0xff] %v347_v37 }
 0x215   :  { %v477_v39 = vpop.eup %476  ;;  %356 = vst [vmem:[#allocation2 + $0x20] sm:$0xff] %v348_v38 }
 0x216   :  { %v479_v40 = vpop.eup %478  ;;  %v349_v41 = vmul.f32 %v477_v39, %v450_v8 }
 0x217   :  { %v350_v42 = vmul.f32 %v479_v40, %v570_v62 }
 0x218   :  { %357 = vst [vmem:[#allocation2 + $0x28] sm:$0xff] %v349_v41 }
 0x219   :  { %v481_v43 = vpop.eup %480  ;;  %358 = vst [vmem:[#allocation2 + $0x30] sm:$0xff] %v350_v42 }
 0x21a   :  { %v351_v44 = vmul.f32 %v481_v43, %v449_v4 }
 0x21c   :  { %359 = vst [vmem:[#allocation2 + $0x38] sm:$0xff] %v351_v44 }
 0x21d   :  { %493 = shalt.err (!%p490_p4)
}
 0x21e   :  { %s494_s4 = scalar_lea.hbm %s592_s2, 1024 }
 0x21f   :  { %p495_p5 = scmp.ne.s32.totalorder %s592_s2, %s494_s4  ;;  %p498_p6 = scmp.lt.u32.totalorder %s494_s4, %s592_s2 }
 0x221   :  { %p500_p7 = pnand %p498_p6, %p495_p5 }
 0x223   :  { %503 = shalt.err (!%p500_p7)
}
 0x224   :  { %s509_s9 = smov 128   ;;  %s510_s10 = smov 8  }
 0x225   :  { %371 = dma.vmem_to_hbm [thread:$0]  %s366_s28, 1024, %s592_s2, [#allocation3], %s509_s9, %s509_s9, %s510_s10  }
 0x226   :  { %504 = dma.done.wait [#allocation3], 1024  }
 0x227   :  { %505 = vsyncadd [#allocation3], 4294966272 }
 0x228   :  { %375 = vsyncpa [#allocation3], 1 }

</bundles_post_ra>
